<compile_context>
chip_gen: v7x
topology: tpu7x:2x2x1
jax: 0.10.0
libtpu: 0.0.40
codegen_flags: <defaults>
</compile_context>

<pallas_src>
import jax
import jax.numpy as jnp
from jax.experimental import pallas as pl
from jax.experimental.pallas import tpu as pltpu

LANE = 128
SUBLANE = 8
_SMALL_MAX_NODES = 1024           # single fused pallas_call if n_pad <= this
_VMEM_BUDGET = 24 * 1024 * 1024   # headroom under the 32 MiB scoped default


def _round_up(x, m):
    return (x + m - 1) // m * m


def _pad2(x, rows, cols):
    r, c = x.shape
    return jnp.pad(x, ((0, rows - r), (0, cols - c)))


# ---------------------------------------------------------------------------
# Kernels
# ---------------------------------------------------------------------------
def _fused_gcn_kernel(a_ref, am_ref, x_ref, w1_ref, b1_ref, w2_ref, b2_ref,
                      w4_ref, b4_ref, o_ref):
    """Entire forward in one kernel (small graphs: everything resident in VMEM).

    Uses the exact re-associations A @ (H W) == (A @ H) @ W and
    mean_rows(A @ (H W4) + b4) == ((colsum(A)/n) @ H) @ W4 + b4.
    All matmul inputs are bf16; accumulation is f32.
    """
    # conv1 + relu
    ah = jnp.dot(a_ref[...], x_ref[...], preferred_element_type=jnp.float32)
    h = jnp.maximum(
        jnp.dot(ah.astype(jnp.bfloat16), w1_ref[...],
                preferred_element_type=jnp.float32) + b1_ref[...], 0.0)
    # conv2 + relu
    ah = jnp.dot(a_ref[...], h.astype(jnp.bfloat16),
                 preferred_element_type=jnp.float32)
    h = jnp.maximum(
        jnp.dot(ah.astype(jnp.bfloat16), w2_ref[...],
                preferred_element_type=jnp.float32) + b2_ref[...], 0.0)
    # conv4 fused with dgl.mean_nodes
    z = jnp.dot(am_ref[...], h.astype(jnp.bfloat16),
                preferred_element_type=jnp.float32)
    o_ref[...] = jnp.dot(z.astype(jnp.bfloat16), w4_ref[...],
                         preferred_element_type=jnp.float32) + b4_ref[...]


def _layer_relu_kernel(a_ref, h_ref, w_ref, b_ref, o_ref):
    """One GraphConv layer row tile:  relu((A_tile @ H) @ W + b)."""
    ah = jnp.dot(a_ref[...], h_ref[...], preferred_element_type=jnp.float32)
    y = jnp.dot(ah.astype(jnp.bfloat16), w_ref[...],
                preferred_element_type=jnp.float32) + b_ref[...]
    o_ref[...] = jnp.maximum(y, 0.0).astype(o_ref.dtype)


def _layer_readout_kernel(a_ref, am_ref, h_ref, w2_ref, b2_ref, w4_ref, o_ref):
    """conv2 + relu fused with the conv4 + mean_nodes readout (per row tile).

    Emits a per-tile partial graph readout; the tiny cross-tile sum and the
    single b4 add happen in the wrapper, keeping the grid axis 'parallel'.
    """
    ah = jnp.dot(a_ref[...], h_ref[...], preferred_element_type=jnp.float32)
    y = jnp.maximum(
        jnp.dot(ah.astype(jnp.bfloat16), w2_ref[...],
                preferred_element_type=jnp.float32) + b2_ref[...], 0.0)
    z = jnp.dot(am_ref[...], y.astype(jnp.bfloat16),
                preferred_element_type=jnp.float32)            # (1, fh)
    part = jnp.dot(z.astype(jnp.bfloat16), w4_ref[...],
                   preferred_element_type=jnp.float32)         # (1, fo)
    # Sublane-aligned (8, fo) output block; the wrapper reads row 0 per tile.
    o_ref[...] = jnp.broadcast_to(part, o_ref.shape)


# ---------------------------------------------------------------------------
# pallas_call wrappers
# ---------------------------------------------------------------------------
def _fused_gcn_call(a16, am16, x16, w1, b1, w2, b2, w4, b4):
    fo = w4.shape[1]
    return pl.pallas_call(
        _fused_gcn_kernel,
        out_shape=jax.ShapeDtypeStruct((1, fo), jnp.float32),
    )(a16, am16, x16, w1, b1, w2, b2, w4, b4)


def _layer_relu_call(a16, h16, w16, b32, tm, vmem_limit):
    n_pad = a16.shape[0]
    f_in = h16.shape[1]
    f_out = w16.shape[1]
    return pl.pallas_call(
        _layer_relu_kernel,
        out_shape=jax.ShapeDtypeStruct((n_pad, f_out), jnp.bfloat16),
        grid_spec=pltpu.PrefetchScalarGridSpec(
            num_scalar_prefetch=0,
            grid=(n_pad // tm,),
            in_specs=[
                pl.BlockSpec((tm, n_pad), lambda i: (i, 0)),    # A row tile
                pl.BlockSpec((n_pad, f_in), lambda i: (0, 0)),  # resident H
                pl.BlockSpec((f_in, f_out), lambda i: (0, 0)),
                pl.BlockSpec((1, f_out), lambda i: (0, 0)),
            ],
            out_specs=pl.BlockSpec((tm, f_out), lambda i: (i, 0)),
        ),
        compiler_params=pltpu.CompilerParams(
            dimension_semantics=("parallel",),
            vmem_limit_bytes=vmem_limit),
    )(a16, h16, w16, b32)


def _layer_readout_call(a16, am16, h16, w2, b2, w4, tm, vmem_limit):
    n_pad = a16.shape[0]
    fh = w2.shape[1]
    fo = w4.shape[1]
    nt = n_pad // tm
    return pl.pallas_call(
        _layer_readout_kernel,
        out_shape=jax.ShapeDtypeStruct((nt * SUBLANE, fo), jnp.float32),
        grid_spec=pltpu.PrefetchScalarGridSpec(
            num_scalar_prefetch=0,
            grid=(nt,),
            in_specs=[
                pl.BlockSpec((tm, n_pad), lambda i: (i, 0)),    # A row tile
                pl.BlockSpec((1, tm), lambda i: (0, i)),        # a_mean slice
                pl.BlockSpec((n_pad, fh), lambda i: (0, 0)),    # resident h1
                pl.BlockSpec((fh, fh), lambda i: (0, 0)),
                pl.BlockSpec((1, fh), lambda i: (0, 0)),
                pl.BlockSpec((fh, fo), lambda i: (0, 0)),
            ],
            out_specs=pl.BlockSpec((SUBLANE, fo), lambda i: (i, 0)),
        ),
        compiler_params=pltpu.CompilerParams(
            dimension_semantics=("parallel",),
            vmem_limit_bytes=vmem_limit),
    )(a16, am16, h16, w2, b2, w4)


# ---------------------------------------------------------------------------
# Builder / forward
# ---------------------------------------------------------------------------
def _vmem_need(tm, n_pad, f_in, f_out):
    # double-buffered bf16 A tile + resident H + double-buffered output tile
    # + weights / biases (small terms counted with a 2x safety factor)
    return (2 * tm * n_pad * 2
            + 2 * n_pad * f_in * 2
            + 2 * tm * f_out * 4
            + 2 * (f_in * f_out * 2 + f_out * 4))


def _choose_row_tile(n_pad, f_in, f_out, row_tile=None):
    if row_tile is not None:
        assert n_pad % row_tile == 0, "row_tile must divide padded node count"
        return row_tile
    for tm in (512, 256, 128):
        if n_pad % tm == 0 and _vmem_need(tm, n_pad, f_in, f_out) <= _VMEM_BUDGET:
            return tm
    return 128


def build_gcn(a_hat, params, *, force_tiled=False, row_tile=None):
    """Pre-process the static graph + parameters once; return jitted forward(x)."""
    w1, b1, w2, b2, w4, b4 = params
    n = a_hat.shape[0]
    in_feats, _ = w1.shape
    out_len = w4.shape[1]

    n_pad = _round_up(max(n, SUBLANE), LANE)    # lane-dense A, 128-aligned K
    fi = _round_up(in_feats, LANE)
    fh = _round_up(w1.shape[1], LANE)
    fo = _round_up(out_len, LANE)

    # --- static per-graph preprocessing, hoisted out of the forward path ---
    a_p = _pad2(jnp.asarray(a_hat, jnp.float32), n_pad, n_pad)
    a16 = a_p.astype(jnp.bfloat16)
    # dgl.mean_nodes folded into conv4: row-mean of A computed once.
    # Padded columns are zero, so padded nodes never contribute downstream.
    am16 = (jnp.sum(a_p, axis=0, keepdims=True) / n).astype(jnp.bfloat16)

    w1p = _pad2(jnp.asarray(w1, jnp.float32), fi, fh).astype(jnp.bfloat16)
    w2p = _pad2(jnp.asarray(w2, jnp.float32), fh, fh).astype(jnp.bfloat16)
    w4p = _pad2(jnp.asarray(w4, jnp.float32), fh, fo).astype(jnp.bfloat16)
    b1p = _pad2(jnp.asarray(b1, jnp.float32), 1, fh)
    b2p = _pad2(jnp.asarray(b2, jnp.float32), 1, fh)
    b4p = _pad2(jnp.asarray(b4, jnp.float32), 1, fo)

    small = (not force_tiled) and n_pad <= _SMALL_MAX_NODES
    tm = n_pad if small else _choose_row_tile(n_pad, max(fi, fh), fh, row_tile)
    vmem_limit = int(min(max(_vmem_need(tm, n_pad, max(fi, fh), fh) + (8 << 20),
                             32 << 20), 64 << 20))

    def forward(x):
        x16 = _pad2(jnp.asarray(x, jnp.float32), n_pad, fi).astype(jnp.bfloat16)
        if small:
            out = _fused_gcn_call(a16, am16, x16, w1p, b1p, w2p, b2p,
                                  w4p, b4p)[0]
        else:
            # conv1 + relu (row-tiled, pipelined, parallel)
            h1 = _layer_relu_call(a16, x16, w1p, b1p, tm, vmem_limit)
            # conv2 + relu fused with conv4 + mean_nodes (per-tile partials)
            parts = _layer_readout_call(a16, am16, h1, w2p, b2p, w4p,
                                        tm, vmem_limit)
            out = jnp.sum(parts[::SUBLANE], axis=0) + b4p[0]
        return jnp.squeeze(out[:out_len])        # torch.squeeze(hg)

    return jax.jit(forward)


# ---------------------------------------------------------------------------
# Graph / params / reference
# ---------------------------------------------------------------------------
def build_normalized_adjacency(n_nodes):
    """Ring graph (undirected) + self-loops, DGL norm='both' normalization."""
    a = jnp.zeros((n_nodes, n_nodes), dtype=jnp.float32)
    idx = jnp.arange(n_nodes)
    nxt = (idx + 1) % n_nodes
    a = a.at[idx, nxt].set(1.0)
    a = a.at[nxt, idx].set(1.0)
    a = a + jnp.eye(n_nodes, dtype=jnp.float32)            # dgl.add_self_loop
    deg = jnp.sum(a, axis=1)
    d_inv_sqrt = 1.0 / jnp.sqrt(deg)
    return a * d_inv_sqrt[:, None] * d_inv_sqrt[None, :]   # D^-1/2 A D^-1/2


def init_params(key, in_feats, hidden_size, out_len):
    ks = jax.random.split(key, 4)

    def glorot(k, fan_in, fan_out):
        scale = jnp.sqrt(6.0 / (fan_in + fan_out))
        return jax.random.uniform(k, (fan_in, fan_out), jnp.float32,
                                  minval=-scale, maxval=scale)

    w1 = glorot(ks[0], in_feats, hidden_size)
    b1 = jnp.zeros((1, hidden_size), jnp.float32)
    w2 = glorot(ks[1], hidden_size, hidden_size)
    b2 = jnp.zeros((1, hidden_size), jnp.float32)
    # conv3 (ks[2]) would go here but is unused in the reference forward pass
    w4 = glorot(ks[3], hidden_size, out_len)
    b4 = jnp.zeros((1, out_len), jnp.float32)
    return (w1, b1, w2, b2, w4, b4)


def _reference_forward(a_hat, x, params):
    """Plain-JAX reference using the same bf16 cast points as the kernels."""
    w1, b1, w2, b2, w4, b4 = params
    bf = lambda t: t.astype(jnp.bfloat16)

    def layer(h, w, b):
        ah = jnp.dot(bf(a_hat), bf(h), preferred_element_type=jnp.float32)
        return jnp.dot(bf(ah), bf(w), preferred_element_type=jnp.float32) + b

    h = jnp.maximum(layer(x, w1, b1), 0.0)
    h = jnp.maximum(layer(h, w2, b2), 0.0)
    am = jnp.sum(a_hat, axis=0, keepdims=True) / a_hat.shape[0]
    z = jnp.dot(bf(am), bf(h), preferred_element_type=jnp.float32)
    out = jnp.dot(bf(z), bf(w4), preferred_element_type=jnp.float32) + b4
    return jnp.squeeze(out)


if __name__ == "__main__":
    IN_FEATS, HIDDEN, OUT_LEN = 8, 32, 8

    key = jax.random.PRNGKey(0)
    k_feat1, k_feat2, k_param = jax.random.split(key, 3)
    params = init_params(k_param, IN_FEATS, HIDDEN, OUT_LEN)

    # --- small graph: single fused pallas_call, everything resident in VMEM ---
    n1 = 16
    a1 = build_normalized_adjacency(n1)
    x1 = jax.random.normal(k_feat1, (n1, IN_FEATS), dtype=jnp.float32)
    fwd1 = build_gcn(a1, params)
    out1 = jax.block_until_ready(fwd1(x1))
    ref1 = _reference_forward(a1, x1, params)
    assert out1.shape == (OUT_LEN,)
    assert jnp.allclose(out1, ref1, atol=1e-2, rtol=1e-2)

    # --- larger graph: row-tiled pipelined path (conv2/conv4/mean fused) ---
    n2 = 300                                   # pads to 384 nodes, grid = (3,)
    a2 = build_normalized_adjacency(n2)
    x2 = jax.random.normal(k_feat2, (n2, IN_FEATS), dtype=jnp.float32)
    fwd2 = build_gcn(a2, params, force_tiled=True, row_tile=128)
    out2 = jax.block_until_ready(fwd2(x2))
    ref2 = _reference_forward(a2, x2, params)
    assert out2.shape == (OUT_LEN,)
    assert jnp.allclose(out2, ref2, atol=1e-2, rtol=1e-2)

    print("KERNEL_OK")
</pallas_src>

<mosaic_0001>
module attributes {stable_mosaic.version = 11 : i64} {
  func.func @_fused_gcn_kernel(%arg0: memref<128x128xbf16, #tpu.memory_space<vmem>>, %arg1: memref<1x128xbf16, #tpu.memory_space<vmem>>, %arg2: memref<128x128xbf16, #tpu.memory_space<vmem>>, %arg3: memref<128x128xbf16, #tpu.memory_space<vmem>>, %arg4: memref<1x128xf32, #tpu.memory_space<vmem>>, %arg5: memref<128x128xbf16, #tpu.memory_space<vmem>>, %arg6: memref<1x128xf32, #tpu.memory_space<vmem>>, %arg7: memref<128x128xbf16, #tpu.memory_space<vmem>>, %arg8: memref<1x128xf32, #tpu.memory_space<vmem>>, %arg9: memref<1x128xf32, #tpu.memory_space<vmem>>) attributes {dimension_semantics = [], scalar_prefetch = 0 : i64, scratch_operands = 0 : i64, tpu.core_type = #tpu.core_type<tc>} {
    %c0 = arith.constant 0 : index
    %c0_0 = arith.constant 0 : index
    %0 = vector.load %arg0[%c0, %c0_0] : memref<128x128xbf16, #tpu.memory_space<vmem>>, vector<128x128xbf16>
    %c0_1 = arith.constant 0 : index
    %c0_2 = arith.constant 0 : index
    %1 = vector.load %arg2[%c0_1, %c0_2] : memref<128x128xbf16, #tpu.memory_space<vmem>>, vector<128x128xbf16>
    %cst = arith.constant dense<0.000000e+00> : vector<128x128xf32>
    %2 = tpu.matmul %0, %1, %cst {dimension_numbers = #tpu.dot_dimension_numbers<[1], [0], [0], [1], [0, 0, 1, 1], [], []>} : vector<128x128xbf16>, vector<128x128xbf16>, vector<128x128xf32> -> vector<128x128xf32>
    %3 = arith.truncf %2 : vector<128x128xf32> to vector<128x128xbf16>
    %c0_3 = arith.constant 0 : index
    %c0_4 = arith.constant 0 : index
    %4 = vector.load %arg3[%c0_3, %c0_4] : memref<128x128xbf16, #tpu.memory_space<vmem>>, vector<128x128xbf16>
    %cst_5 = arith.constant dense<0.000000e+00> : vector<128x128xf32>
    %5 = tpu.matmul %3, %4, %cst_5 {dimension_numbers = #tpu.dot_dimension_numbers<[1], [0], [0], [1], [0, 0, 1, 1], [], []>} : vector<128x128xbf16>, vector<128x128xbf16>, vector<128x128xf32> -> vector<128x128xf32>
    %c0_6 = arith.constant 0 : index
    %c0_7 = arith.constant 0 : index
    %6 = vector.load %arg4[%c0_6, %c0_7] : memref<1x128xf32, #tpu.memory_space<vmem>>, vector<1x128xf32>
    %7 = vector.broadcast %6 : vector<1x128xf32> to vector<128x128xf32>
    %8 = arith.addf %5, %7 : vector<128x128xf32>
    %cst_8 = arith.constant 0.000000e+00 : f32
    %9 = vector.broadcast %cst_8 : f32 to vector<128x128xf32>
    %10 = arith.maximumf %8, %9 : vector<128x128xf32>
    %c0_9 = arith.constant 0 : index
    %c0_10 = arith.constant 0 : index
    %11 = vector.load %arg0[%c0_9, %c0_10] : memref<128x128xbf16, #tpu.memory_space<vmem>>, vector<128x128xbf16>
    %12 = arith.truncf %10 : vector<128x128xf32> to vector<128x128xbf16>
    %cst_11 = arith.constant dense<0.000000e+00> : vector<128x128xf32>
    %13 = tpu.matmul %11, %12, %cst_11 {dimension_numbers = #tpu.dot_dimension_numbers<[1], [0], [0], [1], [0, 0, 1, 1], [], []>} : vector<128x128xbf16>, vector<128x128xbf16>, vector<128x128xf32> -> vector<128x128xf32>
    %14 = arith.truncf %13 : vector<128x128xf32> to vector<128x128xbf16>
    %c0_12 = arith.constant 0 : index
    %c0_13 = arith.constant 0 : index
    %15 = vector.load %arg5[%c0_12, %c0_13] : memref<128x128xbf16, #tpu.memory_space<vmem>>, vector<128x128xbf16>
    %cst_14 = arith.constant dense<0.000000e+00> : vector<128x128xf32>
    %16 = tpu.matmul %14, %15, %cst_14 {dimension_numbers = #tpu.dot_dimension_numbers<[1], [0], [0], [1], [0, 0, 1, 1], [], []>} : vector<128x128xbf16>, vector<128x128xbf16>, vector<128x128xf32> -> vector<128x128xf32>
    %c0_15 = arith.constant 0 : index
    %c0_16 = arith.constant 0 : index
    %17 = vector.load %arg6[%c0_15, %c0_16] : memref<1x128xf32, #tpu.memory_space<vmem>>, vector<1x128xf32>
    %18 = vector.broadcast %17 : vector<1x128xf32> to vector<128x128xf32>
    %19 = arith.addf %16, %18 : vector<128x128xf32>
    %cst_17 = arith.constant 0.000000e+00 : f32
    %20 = vector.broadcast %cst_17 : f32 to vector<128x128xf32>
    %21 = arith.maximumf %19, %20 : vector<128x128xf32>
    %c0_18 = arith.constant 0 : index
    %c0_19 = arith.constant 0 : index
    %22 = vector.load %arg1[%c0_18, %c0_19] : memref<1x128xbf16, #tpu.memory_space<vmem>>, vector<1x128xbf16>
    %23 = arith.truncf %21 : vector<128x128xf32> to vector<128x128xbf16>
    %cst_20 = arith.constant dense<0.000000e+00> : vector<1x128xf32>
    %24 = tpu.matmul %22, %23, %cst_20 {dimension_numbers = #tpu.dot_dimension_numbers<[1], [0], [0], [1], [0, 0, 1, 1], [], []>} : vector<1x128xbf16>, vector<128x128xbf16>, vector<1x128xf32> -> vector<1x128xf32>
    %25 = arith.truncf %24 : vector<1x128xf32> to vector<1x128xbf16>
    %c0_21 = arith.constant 0 : index
    %c0_22 = arith.constant 0 : index
    %26 = vector.load %arg7[%c0_21, %c0_22] : memref<128x128xbf16, #tpu.memory_space<vmem>>, vector<128x128xbf16>
    %cst_23 = arith.constant dense<0.000000e+00> : vector<1x128xf32>
    %27 = tpu.matmul %25, %26, %cst_23 {dimension_numbers = #tpu.dot_dimension_numbers<[1], [0], [0], [1], [0, 0, 1, 1], [], []>} : vector<1x128xbf16>, vector<128x128xbf16>, vector<1x128xf32> -> vector<1x128xf32>
    %c0_24 = arith.constant 0 : index
    %c0_25 = arith.constant 0 : index
    %28 = vector.load %arg8[%c0_24, %c0_25] : memref<1x128xf32, #tpu.memory_space<vmem>>, vector<1x128xf32>
    %29 = arith.addf %27, %28 : vector<1x128xf32>
    %c0_26 = arith.constant 0 : index
    %c0_27 = arith.constant 0 : index
    %30 = vector.load %arg9[%c0_26, %c0_27] : memref<1x128xf32, #tpu.memory_space<vmem>>, vector<1x128xf32>
    tpu.vector_store %arg9[%c0_26, %c0_27], %29 {strides = array<i32>} : memref<1x128xf32, #tpu.memory_space<vmem>>, vector<1x128xf32>,
    return
  }
}

</mosaic_0001>

<bundles_post_ra>
// kernel: forward.1
= control target key start
LH: loop header
LB: loop body
LE: loop exit
PB: predicated region body
PF: predicated region fallthrough
CT: control target
= control target key end

     0   :  { %14 = vsyncpa [#allocation3], 0  ;;  %s1536_s0 = inlined_call_operand.vmem [shape: bf16[128,128], index: 0, kind: input, shape index: {}]   ;;  %s1537_s1 = inlined_call_operand.vmem [shape: bf16[1,128], index: 1, kind: input, shape index: {}]   ;;  %s1538_s2 = inlined_call_operand.vmem [shape: bf16[128,128], index: 2, kind: input, shape index: {}]   ;;  %s1539_s3 = inlined_call_operand.vmem [shape: bf16[128,128], index: 3, kind: input, shape index: {}]   ;;  %s1540_s4 = inlined_call_operand.vmem [shape: f32[1,128], index: 4, kind: input, shape index: {}, may-alias: {4,6,8}]   ;;  %s1541_s5 = inlined_call_operand.hbm [shape: bf16[128,128], index: 5, kind: input, shape index: {}]   ;;  %s1542_s6 = inlined_call_operand.vmem [shape: f32[1,128], index: 6, kind: input, shape index: {}, may-alias: {4,6,8}]   ;;  %s1543_s7 = inlined_call_operand.hbm [shape: bf16[128,128], index: 7, kind: input, shape index: {}]   ;;  %s1544_s8 = inlined_call_operand.vmem [shape: f32[1,128], index: 8, kind: input, shape index: {}, may-alias: {4,6,8}]   ;;  %s1545_s9 = inlined_call_operand.vmem [shape: f32[1,128], index: 9, kind: output, shape index: {}]  }
   0x1   :  { %15 = vsyncpa [#allocation5], 0  ;;  %s1323_s30 = smov [#allocation2]   ;;  %s1275_s13 = scalar_lea.hbm %s1541_s5, 1024 }
   0x2   :  { %s31_s10 = sshll.u32 %s1323_s30, 4  ;;  %p1276_p0 = scmp.ne.s32.totalorder %s1541_s5, %s1275_s13  ;;  %s32_s10 = int_to_ptr.vmem [resolvable:$true] %s31_s10 }
   0x3   :  { %p1279_p1 = scmp.lt.u32.totalorder %s1275_s13, %s1541_s5 }
   0x5   :  { %p1281_p2 = pnand %p1279_p1, %p1276_p0 }
   0x7   :  { %1284 = shalt.err (!%p1281_p2)
}
   0x8   :  { %s1285_s18 = scalar_lea.vmem %s32_s10, 1024  ;;  %p1290_p4 = scmp.lt.s32.totalorder %s32_s10, %s32_s10 }
   0x9   :  { %p1286_p3 = scmp.ne.s32.totalorder %s32_s10, %s1285_s18  ;;  %p1291_p5 = scmp.lt.s32.totalorder %s1285_s18, %s1285_s18 }
   0xb   :  { %p1292_p6 = por %p1291_p5, %p1290_p4 }
   0xd   :  { %p1293_p7 = pnand %p1292_p6, %p1286_p3 }
   0xf   :  { %1296 = shalt.err (!%p1293_p7)
}
  0x10   :  { %s1324_s19 = smov 64   ;;  %s1325_s20 = smov 4  }
  0x11   :  { %37 = dma.hbm_to_vmem [thread:$0]  %s1541_s5, 1024, %s32_s10, [#allocation3], %s1324_s19, %s1324_s19, %s1325_s20  }
  0x12   :  { %s1326_s23 = smov [#allocation4]   ;;  %s1297_s27 = scalar_lea.hbm %s1543_s7, 1024 }
  0x13   :  { %s45_s24 = sshll.u32 %s1326_s23, 4  ;;  %p1298_p8 = scmp.ne.s32.totalorder %s1543_s7, %s1297_s27  ;;  %s46_s24 = int_to_ptr.vmem [resolvable:$true] %s45_s24 }
  0x14   :  { %p1301_p9 = scmp.lt.u32.totalorder %s1297_s27, %s1543_s7 }
  0x16   :  { %p1303_p10 = pnand %p1301_p9, %p1298_p8 }
  0x18   :  { %1306 = shalt.err (!%p1303_p10)
}
  0x19   :  { %s1307_s12 = scalar_lea.vmem %s46_s24, 1024  ;;  %p1312_p12 = scmp.lt.s32.totalorder %s46_s24, %s46_s24 }
  0x1a   :  { %p1308_p11 = scmp.ne.s32.totalorder %s46_s24, %s1307_s12  ;;  %p1313_p13 = scmp.lt.s32.totalorder %s1307_s12, %s1307_s12 }
  0x1c   :  { %p1314_p0 = por %p1313_p13, %p1312_p12 }
  0x1e   :  { %p1315_p1 = pnand %p1314_p0, %p1308_p11 }
  0x20   :  { %1318 = shalt.err (!%p1315_p1)
}
  0x21   :  { %51 = dma.hbm_to_vmem [thread:$0]  %s1543_s7, 1024, %s46_s24, [#allocation5], %s1324_s19, %s1324_s19, %s1325_s20  }
  0x22   :  { %1319 = dma.done.wait [#allocation3], 1024  }
  0x23   :  { %1320 = vsyncadd [#allocation3], 4294966272 }
  0x24   :  { %1321 = dma.done.wait [#allocation5], 1024  }
  0x25   :  { %1322 = vsyncadd [#allocation5], 4294966272  ;;  %v1235_v0 = vld [vmem:[%s1538_s2] sm:$0xff]   ;;  %v1236_v1 = vld [vmem:[%s1538_s2 + $0x8] sm:$0xff]   ;;  %vm1328_vm0 = vmmov 0  }
  0x26   :  { %1061 = vmatprep.subr.bf16.mxu0 %v1235_v0  ;;  %v1237_v2 = vld [vmem:[%s1538_s2 + $0x10] sm:$0xff]   ;;  %v1238_v3 = vld [vmem:[%s1538_s2 + $0x18] sm:$0xff]   ;;  %v1243_v4 = vld [vmem:[%s1536_s0] sm:$0xff]  }
  0x27   :  { %1062 = vmatpush3.bf16.msra.mxu0 %v1235_v0  ;;  %1077 = vmatprep.mubr.bf16.mxu0 %v1243_v4  ;;  %v1239_v5 = vld [vmem:[%s1538_s2 + $0x20] sm:$0xff]   ;;  %v1240_v6 = vld [vmem:[%s1538_s2 + $0x28] sm:$0xff]   ;;  %v1241_v9 = vld [vmem:[%s1538_s2 + $0x30] sm:$0xff]  }
  0x28   :  { %1063 = vmatprep.subr.bf16.mxu0 %v1236_v1  ;;  %v1251_v7 = vld [vmem:[%s1539_s3] sm:$0xff]   ;;  %v1252_v8 = vld [vmem:[%s1539_s3 + $0x8] sm:$0xff]   ;;  %v1253_v10 = vld [vmem:[%s1539_s3 + $0x10] sm:$0xff]  }
  0x29   :  { %1093 = vmatprep.subr.bf16.mxu1 %v1251_v7  ;;  %v1242_v11 = vld [vmem:[%s1538_s2 + $0x38] sm:$0xff]   ;;  %v1255_v13 = vld [vmem:[%s1539_s3 + $0x20] sm:$0xff]   ;;  %v1448_v14 = vld [vmem:[%s1536_s0 + $0x8] sm:$0xff]  }
  0x2a   :  { %1094 = vmatpush3.bf16.msra.mxu1 %v1251_v7  ;;  %v1254_v12 = vld [vmem:[%s1539_s3 + $0x18] sm:$0xff]   ;;  %v1453_v15 = vld [vmem:[%s1536_s0 + $0x10] sm:$0xff]   ;;  %v1256_v16 = vld [vmem:[%s1539_s3 + $0x28] sm:$0xff]  }
  0x2b   :  { %1064 = vmatpush3.bf16.msra.mxu0 %v1236_v1  ;;  %1095 = vmatprep.subr.bf16.mxu1 %v1252_v8  ;;  %v1257_v17 = vld [vmem:[%s1539_s3 + $0x30] sm:$0xff]   ;;  %v1466_v18 = vld [vmem:[%s1536_s0 + $0x18] sm:$0xff]   ;;  %v1471_v19 = vld [vmem:[%s1536_s0 + $0x20] sm:$0xff]  }
  0x2c   :  { %1065 = vmatprep.subr.bf16.mxu0 %v1237_v2  ;;  %v1478_v20 = vld [vmem:[%s1536_s0 + $0x28] sm:$0xff]   ;;  %v1483_v21 = vld [vmem:[%s1536_s0 + $0x30] sm:$0xff]   ;;  %v1490_v22 = vld [vmem:[%s1536_s0 + $0x38] sm:$0xff]  }
  0x2d   :  { %v1258_v23 = vld [vmem:[%s1539_s3 + $0x38] sm:$0xff]   ;;  %v1259_v48 = vld [vmem:[#allocation2] sm:$0xff]   ;;  %v1260_v49 = vld [vmem:[#allocation2 + $0x8] sm:$0xff]  }
  0x2e   :  { %1096 = vmatpush3.bf16.msra.mxu1 %v1252_v8  ;;  %v1261_v50 = vld [vmem:[#allocation2 + $0x10] sm:$0xff]   ;;  %v1262_v51 = vld [vmem:[#allocation2 + $0x18] sm:$0xff]   ;;  %v1263_v52 = vld [vmem:[#allocation2 + $0x20] sm:$0xff]  }
  0x2f   :  { %1066 = vmatpush3.bf16.msra.mxu0 %v1237_v2  ;;  %1097 = vmatprep.subr.bf16.mxu1 %v1253_v10  ;;  %v1264_v53 = vld [vmem:[#allocation2 + $0x28] sm:$0xff]   ;;  %v1265_v54 = vld [vmem:[#allocation2 + $0x30] sm:$0xff]   ;;  %v953_v55 = vld [vmem:[%s1540_s4] ss:$0 sm:$0xff] }
  0x30   :  { %1067 = vmatprep.subr.bf16.mxu0 %v1238_v3 }
  0x32   :  { %1098 = vmatpush3.bf16.msra.mxu1 %v1253_v10 }
  0x33   :  { %1068 = vmatpush3.bf16.msra.mxu0 %v1238_v3  ;;  %1099 = vmatprep.subr.bf16.mxu1 %v1254_v12 }
  0x34   :  { %1069 = vmatprep.subr.bf16.mxu0 %v1239_v5 }
  0x36   :  { %1100 = vmatpush3.bf16.msra.mxu1 %v1254_v12 }
  0x37   :  { %1070 = vmatpush3.bf16.msra.mxu0 %v1239_v5  ;;  %1101 = vmatprep.subr.bf16.mxu1 %v1255_v13 }
  0x38   :  { %1071 = vmatprep.subr.bf16.mxu0 %v1240_v6 }
  0x3a   :  { %1102 = vmatpush3.bf16.msra.mxu1 %v1255_v13 }
  0x3b   :  { %1072 = vmatpush3.bf16.msra.mxu0 %v1240_v6  ;;  %1103 = vmatprep.subr.bf16.mxu1 %v1256_v16 }
  0x3c   :  { %1073 = vmatprep.subr.bf16.mxu0 %v1241_v9 }
  0x3e   :  { %1104 = vmatpush3.bf16.msra.mxu1 %v1256_v16 }
  0x3f   :  { %1074 = vmatpush3.bf16.msra.mxu0 %v1241_v9  ;;  %1105 = vmatprep.subr.bf16.mxu1 %v1257_v17 }
  0x40   :  { %1075 = vmatprep.subr.bf16.mxu0 %v1242_v11 }
  0x42   :  { %1106 = vmatpush3.bf16.msra.mxu1 %v1257_v17 }
  0x43   :  { %1076 = vmatpush3.bf16.msra.mxu0 %v1242_v11  ;;  %1107 = vmatprep.subr.bf16.mxu1 %v1258_v23 }
  0x46   :  { %1078 = vmatmul.mubr.bf16.vlgmr.msra.gmra.mrb[0].mxu0 %v1448_v14  ;;  %1108 = vmatpush3.bf16.msra.mxu1 %v1258_v23 }
  0x47   :  { %1081 = vmatprep.mubr.bf16.mxu0 %v1453_v15  ;;  %1157 = vmatprep.subr.bf16.mxu1 %v1259_v48 }
  0x4e   :  { %1082 = vmatmul.mubr.bf16.gmra.mrb[4].mxu0 %v1466_v18 }
  0x4f   :  { %1085 = vmatprep.mubr.bf16.mxu0 %v1471_v19 }
  0x56   :  { %1086 = vmatmul.mubr.bf16.gmra.mrb[8].mxu0 %v1478_v20 }
  0x57   :  { %1089 = vmatprep.mubr.bf16.mxu0 %v1483_v21 }
  0x5e   :  { %1090 = vmatmul.mubr.bf16.gmra.mrb[12].mxu0 %v1490_v22 }
  0x5f   :  { %1141 = vmatprep.mubr.bf16.mxu0 %v1243_v4 }
 0x119   :  { %v1079_v24 = vpop.f32.mrb[0].mxu0 }
 0x11a   :  { %v223_v25 = vpop.f32.mrb[1].mxu0 }
 0x11b   :  { %v1080_v26 = vpop.f32.mrb[2].mxu0 }
 0x11c   :  { %v287_v27 = vpack.c.bf16 %v1080_v26, %v1079_v24  ;;  %v226_v28 = vpop.f32.mrb[3].mxu0 }
 0x11d   :  { %v286_v29 = vpack.c.bf16 %v226_v28, %v223_v25 }
 0x11f   :  { %1109 = vmatprep.mubr.bf16.mxu1 %v286_v29 }
 0x120   :  { %1110 = vmatmul.mubr.bf16.vlgmr.msra.gmra.mrb[0].mxu1 %v287_v27 }
 0x121   :  { %v1083_v30 = vpop.f32.mrb[4].mxu0  ;;  %1158 = vmatpush3.bf16.msra.mxu1 %v1259_v48 }
 0x122   :  { %v239_v31 = vpop.f32.mrb[5].mxu0  ;;  %1159 = vmatprep.subr.bf16.mxu1 %v1260_v49 }
 0x123   :  { %v1084_v32 = vpop.f32.mrb[6].mxu0 }
 0x124   :  { %v289_v33 = vpack.c.bf16 %v1084_v32, %v1083_v30  ;;  %v242_v34 = vpop.f32.mrb[7].mxu0 }
 0x125   :  { %v288_v35 = vpack.c.bf16 %v242_v34, %v239_v31  ;;  %1160 = vmatpush3.bf16.msra.mxu1 %v1260_v49 }
 0x126   :  { %1161 = vmatprep.subr.bf16.mxu1 %v1261_v50 }
 0x127   :  { %1113 = vmatprep.mubr.bf16.mxu1 %v288_v35 }
 0x128   :  { %1114 = vmatmul.mubr.bf16.gmra.mrb[4].mxu1 %v289_v33 }
 0x129   :  { %v1087_v36 = vpop.f32.mrb[8].mxu0  ;;  %1162 = vmatpush3.bf16.msra.mxu1 %v1261_v50 }
 0x12a   :  { %v255_v37 = vpop.f32.mrb[9].mxu0  ;;  %1163 = vmatprep.subr.bf16.mxu1 %v1262_v51 }
 0x12b   :  { %v1088_v38 = vpop.f32.mrb[10].mxu0 }
 0x12c   :  { %v291_v39 = vpack.c.bf16 %v1088_v38, %v1087_v36  ;;  %v258_v40 = vpop.f32.mrb[11].mxu0 }
 0x12d   :  { %v290_v41 = vpack.c.bf16 %v258_v40, %v255_v37  ;;  %1164 = vmatpush3.bf16.msra.mxu1 %v1262_v51 }
 0x12e   :  { %1165 = vmatprep.subr.bf16.mxu1 %v1263_v52 }
 0x12f   :  { %1117 = vmatprep.mubr.bf16.mxu1 %v290_v41 }
 0x130   :  { %1118 = vmatmul.mubr.bf16.gmra.mrb[8].mxu1 %v291_v39 }
 0x131   :  { %v1091_v42 = vpop.f32.mrb[12].mxu0  ;;  %1166 = vmatpush3.bf16.msra.mxu1 %v1263_v52 }
 0x132   :  { %v271_v43 = vpop.f32.mrb[13].mxu0  ;;  %1167 = vmatprep.subr.bf16.mxu1 %v1264_v53 }
 0x133   :  { %v1092_v44 = vpop.f32.mrb[14].mxu0 }
 0x134   :  { %v293_v45 = vpack.c.bf16 %v1092_v44, %v1091_v42  ;;  %v274_v46 = vpop.f32.mrb[15].mxu0 }
 0x135   :  { %v292_v47 = vpack.c.bf16 %v274_v46, %v271_v43  ;;  %1168 = vmatpush3.bf16.msra.mxu1 %v1264_v53 }
 0x136   :  { %1169 = vmatprep.subr.bf16.mxu1 %v1265_v54 }
 0x137   :  { %1121 = vmatprep.mubr.bf16.mxu1 %v292_v47 }
 0x138   :  { %1122 = vmatmul.mubr.bf16.gmra.mrb[12].mxu1 %v293_v45 }
 0x139   :  { %1170 = vmatpush3.bf16.msra.mxu1 %v1265_v54 }
 0x1f3   :  { %v1111_v56 = vpop.f32.mrb[0].mxu1 }
 0x1f4   :  { %v408_v57 = vadd.f32 %v1111_v56, %v953_v55  ;;  %v399_v58 = vpop.f32.mrb[1].mxu1 }
 0x1f5   :  { %v400_v59 = vadd.f32 %v953_v55, %v399_v58  ;;  %v1112_v60 = vpop.f32.mrb[2].mxu1 }
 0x1f6   :  { %v411_v61 = vadd.f32 %v1112_v60, %v953_v55  ;;  %v402_v62 = vpop.f32.mrb[3].mxu1  ;;  %v464_v0 = vmax.f32 %v408_v57, 0.0 }
 0x1f7   :  { %v403_v63 = vadd.f32 %v953_v55, %v402_v62  ;;  %v462_v2 = vmax.f32 %v400_v59, 0.0 }
 0x1f8   :  { %v465_v1 = vmax.f32 %v411_v61, 0.0 }
 0x1f9   :  { %v463_v3 = vmax.f32 %v403_v63, 0.0 }
 0x1fa   :  { %v479_v4 = vpack.c.bf16 %v465_v1, %v464_v0 }
 0x1fb   :  { %v478_v5 = vpack.c.bf16 %v463_v3, %v462_v2  ;;  %v1115_v6 = vpop.f32.mrb[4].mxu1 }
 0x1fc   :  { %v424_v7 = vadd.f32 %v1115_v6, %v953_v55  ;;  %v415_v8 = vpop.f32.mrb[5].mxu1 }
 0x1fd   :  { %v416_v9 = vadd.f32 %v953_v55, %v415_v8  ;;  %v1116_v10 = vpop.f32.mrb[6].mxu1  ;;  %1125 = vmatprep.subr.bf16.mxu0 %v478_v5 }
 0x1fe   :  { %v427_v11 = vadd.f32 %v1116_v10, %v953_v55  ;;  %v418_v12 = vpop.f32.mrb[7].mxu1  ;;  %1126 = vmatpush3.bf16.msra.mxu0 %v478_v5  ;;  %v468_v16 = vmax.f32 %v424_v7, 0.0  ;;  %v1267_v10 = vld [vmem:[#allocation4] sm:$0xff]  }
 0x1ff   :  { %v419_v13 = vadd.f32 %v953_v55, %v418_v12  ;;  %1127 = vmatprep.subr.bf16.mxu0 %v479_v4  ;;  %v466_v23 = vmax.f32 %v416_v9, 0.0  ;;  %v1327_v9 = vmov 0.0   ;;  %v1269_v12 = vld [vmem:[#allocation4 + $0x10] sm:$0xff]  }
 0x200   :  { %v469_v17 = vmax.f32 %v427_v11, 0.0  ;;  %v1268_v11 = vld [vmem:[#allocation4 + $0x8] sm:$0xff]  }
 0x201   :  { %v467_v24 = vmax.f32 %v419_v13, 0.0  ;;  %v1270_v13 = vld [vmem:[#allocation4 + $0x18] sm:$0xff]  }
 0x202   :  { %v481_v25 = vpack.c.bf16 %v469_v17, %v468_v16  ;;  %1128 = vmatpush3.bf16.msra.mxu0 %v479_v4  ;;  %v1271_v16 = vld [vmem:[#allocation4 + $0x20] sm:$0xff]   ;;  %v1272_v17 = vld [vmem:[#allocation4 + $0x28] sm:$0xff]  }
 0x203   :  { %v480_v26 = vpack.c.bf16 %v467_v24, %v466_v23  ;;  %v1119_v27 = vpop.f32.mrb[8].mxu1  ;;  %v1273_v23 = vld [vmem:[#allocation4 + $0x30] sm:$0xff]   ;;  %v962_v24 = vld [vmem:[%s1542_s6] ss:$0 sm:$0xff] }
 0x204   :  { %v440_v28 = vadd.f32 %v1119_v27, %v953_v55  ;;  %v431_v29 = vpop.f32.mrb[9].mxu1 }
 0x205   :  { %v432_v30 = vadd.f32 %v953_v55, %v431_v29  ;;  %v1120_v31 = vpop.f32.mrb[10].mxu1  ;;  %1129 = vmatprep.subr.bf16.mxu0 %v480_v26 }
 0x206   :  { %v443_v32 = vadd.f32 %v1120_v31, %v953_v55  ;;  %v434_v33 = vpop.f32.mrb[11].mxu1  ;;  %1130 = vmatpush3.bf16.msra.mxu0 %v480_v26  ;;  %v472_v35 = vmax.f32 %v440_v28, 0.0 }
 0x207   :  { %v435_v34 = vadd.f32 %v953_v55, %v434_v33  ;;  %1131 = vmatprep.subr.bf16.mxu0 %v481_v25  ;;  %v470_v37 = vmax.f32 %v432_v30, 0.0 }
 0x208   :  { %v473_v36 = vmax.f32 %v443_v32, 0.0 }
 0x209   :  { %v471_v38 = vmax.f32 %v435_v34, 0.0 }
 0x20a   :  { %v483_v39 = vpack.c.bf16 %v473_v36, %v472_v35  ;;  %1132 = vmatpush3.bf16.msra.mxu0 %v481_v25 }
 0x20b   :  { %v482_v40 = vpack.c.bf16 %v471_v38, %v470_v37  ;;  %v1123_v41 = vpop.f32.mrb[12].mxu1 }
 0x20c   :  { %v456_v42 = vadd.f32 %v1123_v41, %v953_v55  ;;  %v447_v43 = vpop.f32.mrb[13].mxu1 }
 0x20d   :  { %v448_v44 = vadd.f32 %v953_v55, %v447_v43  ;;  %v1124_v45 = vpop.f32.mrb[14].mxu1  ;;  %1133 = vmatprep.subr.bf16.mxu0 %v482_v40 }
 0x20e   :  { %v459_v46 = vadd.f32 %v1124_v45, %v953_v55  ;;  %v450_v47 = vpop.f32.mrb[15].mxu1  ;;  %1134 = vmatpush3.bf16.msra.mxu0 %v482_v40  ;;  %v476_v49 = vmax.f32 %v456_v42, 0.0 }
 0x20f   :  { %v451_v48 = vadd.f32 %v953_v55, %v450_v47  ;;  %1135 = vmatprep.subr.bf16.mxu0 %v483_v39  ;;  %v474_v51 = vmax.f32 %v448_v44, 0.0  ;;  %v1266_v55 = vld [vmem:[#allocation2 + $0x38] sm:$0xff]  }
 0x210   :  { %v477_v50 = vmax.f32 %v459_v46, 0.0  ;;  %1171 = vmatprep.subr.bf16.mxu1 %v1266_v55 }
 0x211   :  { %v475_v52 = vmax.f32 %v451_v48, 0.0  ;;  %1172 = vmatpush3.bf16.msra.mxu1 %v1266_v55 }
 0x212   :  { %v485_v53 = vpack.c.bf16 %v477_v50, %v476_v49  ;;  %1136 = vmatpush3.bf16.msra.mxu0 %v483_v39  ;;  %1209 = vmatprep.subr.bf16.mxu1 %v1327_v9 }
 0x213   :  { %v484_v54 = vpack.c.bf16 %v475_v52, %v474_v51 }
 0x215   :  { %1137 = vmatprep.subr.bf16.mxu0 %v484_v54 }
 0x216   :  { %1138 = vmatpush3.bf16.msra.mxu0 %v484_v54 }
 0x217   :  { %1139 = vmatprep.subr.bf16.mxu0 %v485_v53 }
 0x21a   :  { %1140 = vmatpush3.bf16.msra.mxu0 %v485_v53 }
 0x21b   :  { %1189 = vmatprep.subr.bf16.mxu0 %v1327_v9 }
 0x21d   :  { %1142 = vmatmul.mubr.bf16.vlgmr.msra.gmra.mrb[16].mxu0 %v1448_v14 }
 0x21e   :  { %1145 = vmatprep.mubr.bf16.mxu0 %v1453_v15 }
 0x225   :  { %1146 = vmatmul.mubr.bf16.gmra.mrb[20].mxu0 %v1466_v18 }
 0x226   :  { %1149 = vmatprep.mubr.bf16.mxu0 %v1471_v19 }
 0x22d   :  { %1150 = vmatmul.mubr.bf16.gmra.mrb[24].mxu0 %v1478_v20 }
 0x22e   :  { %1153 = vmatprep.mubr.bf16.mxu0 %v1483_v21 }
 0x235   :  { %1154 = vmatmul.mubr.bf16.gmra.mrb[28].mxu0 %v1490_v22 }
 0x236   :  { %1205 = vmatprep.mubr.msk.bf16.mxu0 %vm1328_vm0, %v1327_v9 }
 0x2f0   :  { %v1143_v56 = vpop.f32.mrb[16].mxu0 }
 0x2f1   :  { %v520_v57 = vpop.f32.mrb[17].mxu0 }
 0x2f2   :  { %v1144_v58 = vpop.f32.mrb[18].mxu0 }
 0x2f3   :  { %v584_v59 = vpack.c.bf16 %v1144_v58, %v1143_v56  ;;  %v523_v14 = vpop.f32.mrb[19].mxu0 }
 0x2f4   :  { %v583_v60 = vpack.c.bf16 %v523_v14, %v520_v57 }
 0x2f6   :  { %1173 = vmatprep.mubr.bf16.mxu1 %v583_v60 }
 0x2f7   :  { %1174 = vmatmul.mubr.bf16.vlgmr.msra.gmra.mrb[16].mxu1 %v584_v59 }
 0x2f8   :  { %v1147_v15 = vpop.f32.mrb[20].mxu0  ;;  %1210 = vmatpush3.bf16.msra.mxu1 %v1267_v10 }
 0x2f9   :  { %v536_v18 = vpop.f32.mrb[21].mxu0  ;;  %1211 = vmatprep.subr.bf16.mxu1 %v1327_v9 }
 0x2fa   :  { %v1148_v19 = vpop.f32.mrb[22].mxu0 }
 0x2fb   :  { %v586_v61 = vpack.c.bf16 %v1148_v19, %v1147_v15  ;;  %v539_v20 = vpop.f32.mrb[23].mxu0 }
 0x2fc   :  { %v585_v62 = vpack.c.bf16 %v539_v20, %v536_v18  ;;  %1212 = vmatpush3.bf16.msra.mxu1 %v1268_v11  ;;  %v775_v11 = vld [vmem:[%s1537_s1] sm:$0x1] }
 0x2fd   :  { %1213 = vmatprep.subr.bf16.mxu1 %v1327_v9 }
 0x2fe   :  { %1177 = vmatprep.mubr.bf16.mxu1 %v585_v62 }
 0x2ff   :  { %1178 = vmatmul.mubr.bf16.gmra.mrb[20].mxu1 %v586_v61 }
 0x300   :  { %v1151_v21 = vpop.f32.mrb[24].mxu0  ;;  %1214 = vmatpush3.bf16.msra.mxu1 %v1269_v12  ;;  %v1274_v12 = vld [vmem:[#allocation4 + $0x38] sm:$0xff]  }
 0x301   :  { %v552_v22 = vpop.f32.mrb[25].mxu0  ;;  %1215 = vmatprep.subr.bf16.mxu1 %v1327_v9 }
 0x302   :  { %v1152_v63 = vpop.f32.mrb[26].mxu0 }
 0x303   :  { %v588_v0 = vpack.c.bf16 %v1152_v63, %v1151_v21  ;;  %v555_v1 = vpop.f32.mrb[27].mxu0 }
 0x304   :  { %v587_v2 = vpack.c.bf16 %v555_v1, %v552_v22  ;;  %1216 = vmatpush3.bf16.msra.mxu1 %v1270_v13 }
 0x305   :  { %1217 = vmatprep.subr.bf16.mxu1 %v1327_v9 }
 0x306   :  { %1181 = vmatprep.mubr.bf16.mxu1 %v587_v2 }
 0x307   :  { %1182 = vmatmul.mubr.bf16.gmra.mrb[24].mxu1 %v588_v0 }
 0x308   :  { %v1155_v3 = vpop.f32.mrb[28].mxu0  ;;  %1218 = vmatpush3.bf16.msra.mxu1 %v1271_v16 }
 0x309   :  { %v568_v4 = vpop.f32.mrb[29].mxu0  ;;  %1219 = vmatprep.subr.bf16.mxu1 %v1327_v9 }
 0x30a   :  { %v1156_v5 = vpop.f32.mrb[30].mxu0 }
 0x30b   :  { %v590_v6 = vpack.c.bf16 %v1156_v5, %v1155_v3  ;;  %v571_v7 = vpop.f32.mrb[31].mxu0 }
 0x30c   :  { %v589_v8 = vpack.c.bf16 %v571_v7, %v568_v4  ;;  %1220 = vmatpush3.bf16.msra.mxu1 %v1272_v17 }
 0x30d   :  { %1221 = vmatprep.subr.bf16.mxu1 %v1327_v9 }
 0x30e   :  { %1185 = vmatprep.mubr.bf16.mxu1 %v589_v8 }
 0x30f   :  { %1186 = vmatmul.mubr.bf16.gmra.mrb[28].mxu1 %v590_v6 }
 0x310   :  { %1225 = vmatprep.mubr.msk.bf16.mxu1 %vm1328_vm0, %v1327_v9  ;;  %1222 = vmatpush3.bf16.msra.mxu1 %v1273_v23 }
 0x311   :  { %1223 = vmatprep.subr.bf16.mxu1 %v1327_v9 }
 0x314   :  { %1224 = vmatpush3.bf16.msra.mxu1 %v1274_v12 }
 0x3ca   :  { %v1175_v25 = vpop.f32.mrb[16].mxu1 }
 0x3cb   :  { %v705_v26 = vadd.f32 %v1175_v25, %v962_v24  ;;  %v696_v27 = vpop.f32.mrb[17].mxu1  ;;  %v841_v25 = vld [vmem:[%s1544_s8] sm:$0x1] }
 0x3cc   :  { %v697_v28 = vadd.f32 %v962_v24, %v696_v27  ;;  %v1176_v29 = vpop.f32.mrb[18].mxu1 }
 0x3cd   :  { %v708_v30 = vadd.f32 %v1176_v29, %v962_v24  ;;  %v699_v31 = vpop.f32.mrb[19].mxu1  ;;  %v761_v33 = vmax.f32 %v705_v26, 0.0 }
 0x3ce   :  { %v700_v32 = vadd.f32 %v962_v24, %v699_v31  ;;  %v759_v35 = vmax.f32 %v697_v28, 0.0 }
 0x3cf   :  { %v762_v34 = vmax.f32 %v708_v30, 0.0 }
 0x3d0   :  { %v760_v36 = vmax.f32 %v700_v32, 0.0 }
 0x3d1   :  { %v777_v37 = vpack.c.bf16 %v762_v34, %v761_v33 }
 0x3d2   :  { %v776_v38 = vpack.c.bf16 %v760_v36, %v759_v35  ;;  %v1179_v39 = vpop.f32.mrb[20].mxu1 }
 0x3d3   :  { %v721_v40 = vadd.f32 %v1179_v39, %v962_v24  ;;  %v712_v41 = vpop.f32.mrb[21].mxu1 }
 0x3d4   :  { %v713_v42 = vadd.f32 %v962_v24, %v712_v41  ;;  %v1180_v43 = vpop.f32.mrb[22].mxu1  ;;  %1190 = vmatpush3.bf16.msra.mxu0 %v776_v38 }
 0x3d5   :  { %v724_v44 = vadd.f32 %v1180_v43, %v962_v24  ;;  %v715_v45 = vpop.f32.mrb[23].mxu1  ;;  %1191 = vmatprep.subr.bf16.mxu0 %v1327_v9  ;;  %v765_v47 = vmax.f32 %v721_v40, 0.0 }
 0x3d6   :  { %v716_v46 = vadd.f32 %v962_v24, %v715_v45  ;;  %v763_v49 = vmax.f32 %v713_v42, 0.0 }
 0x3d7   :  { %v766_v48 = vmax.f32 %v724_v44, 0.0 }
 0x3d8   :  { %v764_v50 = vmax.f32 %v716_v46, 0.0  ;;  %1192 = vmatpush3.bf16.msra.mxu0 %v777_v37 }
 0x3d9   :  { %v779_v51 = vpack.c.bf16 %v766_v48, %v765_v47  ;;  %1193 = vmatprep.subr.bf16.mxu0 %v1327_v9 }
 0x3da   :  { %v778_v52 = vpack.c.bf16 %v764_v50, %v763_v49  ;;  %v1183_v53 = vpop.f32.mrb[24].mxu1 }
 0x3db   :  { %v737_v54 = vadd.f32 %v1183_v53, %v962_v24  ;;  %v728_v55 = vpop.f32.mrb[25].mxu1 }
 0x3dc   :  { %v729_v56 = vadd.f32 %v962_v24, %v728_v55  ;;  %v1184_v57 = vpop.f32.mrb[26].mxu1  ;;  %1194 = vmatpush3.bf16.msra.mxu0 %v778_v52 }
 0x3dd   :  { %v740_v58 = vadd.f32 %v1184_v57, %v962_v24  ;;  %v731_v59 = vpop.f32.mrb[27].mxu1  ;;  %1195 = vmatprep.subr.bf16.mxu0 %v1327_v9  ;;  %v769_v60 = vmax.f32 %v737_v54, 0.0 }
 0x3de   :  { %v732_v14 = vadd.f32 %v962_v24, %v731_v59  ;;  %v767_v18 = vmax.f32 %v729_v56, 0.0 }
 0x3df   :  { %v770_v15 = vmax.f32 %v740_v58, 0.0 }
 0x3e0   :  { %v768_v19 = vmax.f32 %v732_v14, 0.0  ;;  %1196 = vmatpush3.bf16.msra.mxu0 %v779_v51 }
 0x3e1   :  { %v781_v61 = vpack.c.bf16 %v770_v15, %v769_v60  ;;  %1197 = vmatprep.subr.bf16.mxu0 %v1327_v9 }
 0x3e2   :  { %v780_v20 = vpack.c.bf16 %v768_v19, %v767_v18  ;;  %v1187_v62 = vpop.f32.mrb[28].mxu1 }
 0x3e3   :  { %v753_v21 = vadd.f32 %v1187_v62, %v962_v24  ;;  %v744_v22 = vpop.f32.mrb[29].mxu1 }
 0x3e4   :  { %v745_v63 = vadd.f32 %v962_v24, %v744_v22  ;;  %v1188_v0 = vpop.f32.mrb[30].mxu1  ;;  %1198 = vmatpush3.bf16.msra.mxu0 %v780_v20 }
 0x3e5   :  { %v756_v1 = vadd.f32 %v1188_v0, %v962_v24  ;;  %v747_v2 = vpop.f32.mrb[31].mxu1  ;;  %1199 = vmatprep.subr.bf16.mxu0 %v1327_v9  ;;  %v773_v4 = vmax.f32 %v753_v21, 0.0 }
 0x3e6   :  { %v748_v3 = vadd.f32 %v962_v24, %v747_v2  ;;  %v771_v6 = vmax.f32 %v745_v63, 0.0 }
 0x3e7   :  { %v774_v5 = vmax.f32 %v756_v1, 0.0 }
 0x3e8   :  { %v772_v7 = vmax.f32 %v748_v3, 0.0  ;;  %1200 = vmatpush3.bf16.msra.mxu0 %v781_v61 }
 0x3e9   :  { %v783_v8 = vpack.c.bf16 %v774_v5, %v773_v4  ;;  %1201 = vmatprep.subr.bf16.mxu0 %v1327_v9 }
 0x3ea   :  { %v782_v10 = vpack.c.bf16 %v772_v7, %v771_v6 }
 0x3ec   :  { %1202 = vmatpush3.bf16.msra.mxu0 %v782_v10 }
 0x3ed   :  { %1203 = vmatprep.subr.bf16.mxu0 %v1327_v9 }
 0x3f0   :  { %1204 = vmatpush3.bf16.msra.mxu0 %v783_v8 }
 0x3f3   :  { %1206 = vmatmul.mubr.bf16.vlgmr.msra.gmra.mrb[32].mxu0 %v775_v11 }
 0x4c6   :  { %v818_v13 = vpop.f32.mrb[32].mxu0 }
 0x4c7   :  { %v824_v16 = vpack.c.bf16 %v818_v13, %v818_v13  ;;  %v1207_v17 = vpop.f32.mrb[33].mxu0 }
 0x4c8   :  { %v821_v23 = vpop.f32.mrb[34].mxu0 }
 0x4c9   :  { %v1208_v24 = vpop.f32.mrb[35].mxu0  ;;  %1226 = vmatmul.mubr.bf16.vlgmr.msra.gmra.mrb[32].mxu1 %v824_v16 }
 0x59c   :  { %v924_v26 = vpop.f32.mrb[32].mxu1 }
 0x59d   :  { %v925_v9 = vadd.f32 %v924_v26, %v841_v25  ;;  %v1227_v27 = vpop.f32.mrb[33].mxu1 }
 0x59e   :  { %v927_v28 = vpop.f32.mrb[34].mxu1 }
 0x59f   :  { %930 = vst [vmem:[%s1545_s9] sm:$0x1] %v925_v9  ;;  %v1228_v29 = vpop.f32.mrb[35].mxu1 }
 0x5a0   :  { %935 = vsyncpa [#allocation3], 1 }
 0x5a1   :  { %936 = vsyncpa [#allocation5], 1 }

</bundles_post_ra>
